<compile_context>
chip_gen: v5e
topology: v5e:2x2
jax: 0.10.0
libtpu: 0.0.40
codegen_flags: <defaults>
</compile_context>

<pallas_src>
import jax
import jax.numpy as jnp
from jax.experimental import pallas as pl
from jax.experimental.pallas import tpu as pltpu


def _round_up(n, m):
    return ((n + m - 1) // m) * m


def grn_kernel(x_ref, c_ref, w1_ref, wc_ref, b1_ref, wgf_ref, bgf_ref,
               gamma_ref, beta_ref, o_ref):
    x_bf = x_ref[...]                                   # (TM, Din)  bf16
    c_bf = c_ref[...]                                   # (TM, Dctx) bf16

    # fc1 + context projection: two bf16 MXU dots, f32 accumulation.
    h = (jnp.dot(x_bf, w1_ref[...], preferred_element_type=jnp.float32)
         + jnp.dot(c_bf, wc_ref[...], preferred_element_type=jnp.float32)
         + b1_ref[...])                                 # (TM, H) f32

    # ELU (alpha = 1.0) in f32 -- exp goes to the EUP slot, off the VALU critical path.
    h = jnp.where(h > 0, h, jnp.exp(jnp.minimum(h, 0.0)) - 1.0)

    # dropout: inference -> identity

    # folded fc2 + GLU gate:  g = (h@w2 + b2)@wg + bg == h @ (w2@wg) + (b2@wg + bg)
    g = jnp.dot(h.astype(jnp.bfloat16), wgf_ref[...],
                preferred_element_type=jnp.float32) + bgf_ref[...]   # (TM, Dout) f32

    # GLU reference bug: fc2 applied twice, no sigmoid -> elementwise square; + residual.
    z = g * g + x_bf.astype(jnp.float32)

    # LayerNorm over features (eps = 1e-5, biased variance) -- one-pass statistics.
    dout = z.shape[-1]
    inv_d = 1.0 / dout
    s1 = jnp.sum(z, axis=-1, keepdims=True)
    s2 = jnp.sum(z * z, axis=-1, keepdims=True)
    mean = s1 * inv_d
    var = s2 * inv_d - mean * mean
    zn = (z - mean) * jax.lax.rsqrt(var + 1e-5)
    o_ref[...] = zn * gamma_ref[...] + beta_ref[...]


def grn_forward(x, context, params, *, tile_rows=1024):
    """x: (B, T, Din), context: (B, T, Dctx) -> (B, T, Dout) f32.

    Activations and matmul weights are streamed to the kernel as bf16 (f32 accumulation);
    if the caller already holds bf16 data the casts below are no-ops.
    """
    B, T, Din = x.shape
    Dctx = context.shape[-1]
    H = params["w1"].shape[1]
    Dout = params["w2"].shape[1]
    assert Din == Dout, "project_residual=False path (input_dim == output_dim)"
    N = B * T

    # --- wrapper-side weight folding / casting (tiny, once per call) ---
    wg_fold = jnp.dot(params["w2"], params["wg"],
                      preferred_element_type=jnp.float32).astype(jnp.bfloat16)
    bg_fold = (jnp.dot(params["b2"], params["wg"],
                       preferred_element_type=jnp.float32)
               + params["bg"]).astype(jnp.float32)
    w1 = params["w1"].astype(jnp.bfloat16)
    wc = params["wc"].astype(jnp.bfloat16)

    x2 = x.reshape(N, Din).astype(jnp.bfloat16)          # bf16 row stream
    c2 = context.reshape(N, Dctx).astype(jnp.bfloat16)

    # Row tile: big enough to amortize per-step overhead and fill the MXU M dim, but
    # capped so the grid has >= 2 steps when possible (v7x dual-TC sharding of the
    # "parallel" axis).  Multiple of 8 for the sublane constraint; no padding of N --
    # the ragged last tile is handled by Pallas clipping (LayerNorm is per-row).
    TM = max(8, min(tile_rows, _round_up(pl.cdiv(N, 2), 8)))
    grid = (pl.cdiv(N, TM),)

    def full(shape):
        # Weights/biases are tiny and resident (constant index_map) — negligible VMEM.
        return pl.BlockSpec(shape, lambda i: (0, 0))

    out = pl.pallas_call(
        grn_kernel,
        out_shape=jax.ShapeDtypeStruct((N, Dout), jnp.float32),
        grid_spec=pltpu.PrefetchScalarGridSpec(
            num_scalar_prefetch=0,
            grid=grid,
            in_specs=[
                pl.BlockSpec((TM, Din), lambda i: (i, 0)),    # x rows (bf16)
                pl.BlockSpec((TM, Dctx), lambda i: (i, 0)),   # context rows (bf16)
                full((Din, H)),                               # w1 (bf16)
                full((Dctx, H)),                              # wc (bf16)
                full((1, H)),                                 # b1 (f32)
                full((H, Dout)),                              # folded w2@wg (bf16)
                full((1, Dout)),                              # folded b2@wg + bg (f32)
                full((1, Dout)),                              # layernorm gamma (f32)
                full((1, Dout)),                              # layernorm beta (f32)
            ],
            out_specs=pl.BlockSpec((TM, Dout), lambda i: (i, 0)),
        ),
        compiler_params=pltpu.CompilerParams(
            dimension_semantics=("parallel",)),
    )(x2, c2, w1, wc, params["b1"], wg_fold, bg_fold,
      params["gamma"], params["beta"])

    return out.reshape(B, T, Dout)


def grn_reference(x, context, params):
    """Pure-JAX f32 reference of the PyTorch module (unfolded weights)."""
    B, T, Din = x.shape
    N = B * T
    xf = x.reshape(N, Din).astype(jnp.float32)
    cf = context.reshape(N, -1).astype(jnp.float32)
    h = xf @ params["w1"] + params["b1"] + cf @ params["wc"]
    h = jnp.where(h > 0, h, jnp.exp(jnp.minimum(h, 0.0)) - 1.0)
    y = h @ params["w2"] + params["b2"]
    g = y @ params["wg"] + params["bg"]            # GLU bug: fc2 twice, no sigmoid
    z = g * g + xf
    mean = z.mean(-1, keepdims=True)
    var = ((z - mean) ** 2).mean(-1, keepdims=True)
    zn = (z - mean) / jnp.sqrt(var + 1e-5)
    return (zn * params["gamma"] + params["beta"]).reshape(B, T, -1)


def init_params(key, input_dim, hidden_dim, output_dim, context_dim):
    ks = jax.random.split(key, 8)
    scale = 0.1
    return {
        # stored already transposed: (in, out), so kernel does x @ W
        "w1": scale * jax.random.normal(ks[0], (input_dim, hidden_dim), jnp.float32),
        "b1": scale * jax.random.normal(ks[1], (1, hidden_dim), jnp.float32),
        "wc": scale * jax.random.normal(ks[2], (context_dim, hidden_dim), jnp.float32),
        "w2": scale * jax.random.normal(ks[3], (hidden_dim, output_dim), jnp.float32),
        "b2": scale * jax.random.normal(ks[4], (1, output_dim), jnp.float32),
        "wg": scale * jax.random.normal(ks[5], (output_dim, output_dim), jnp.float32),
        "bg": scale * jax.random.normal(ks[6], (1, output_dim), jnp.float32),
        # PyTorch LayerNorm default init
        "gamma": jnp.ones((1, output_dim), jnp.float32),
        "beta": jnp.zeros((1, output_dim), jnp.float32),
    }


if __name__ == "__main__":
    B, T = 2, 8
    input_dim = 32
    hidden_dim = 64
    output_dim = 32          # == input_dim -> project_residual = False
    context_dim = 16

    key = jax.random.PRNGKey(0)
    kx, kc, kp = jax.random.split(key, 3)
    x = jax.random.normal(kx, (B, T, input_dim), jnp.float32)
    context = jax.random.normal(kc, (B, T, context_dim), jnp.float32)
    params = init_params(kp, input_dim, hidden_dim, output_dim, context_dim)

    out = grn_forward(x, context, params)
    jax.block_until_ready(out)
    assert out.shape == (B, T, output_dim)

    ref = grn_reference(x, context, params)
    # Tolerance loosened vs. the pure-f32 version because activations/weights stream
    # through the matmuls in bf16 (accumulation stays f32).
    assert jnp.allclose(out, ref, atol=5e-2, rtol=5e-2), \
        float(jnp.max(jnp.abs(out - ref)))

    print("KERNEL_OK")
</pallas_src>

<mosaic_0001>
module attributes {stable_mosaic.version = 11 : i64} {
  func.func @grn_kernel(%arg0: i32, %arg1: memref<8x32xbf16, #tpu.memory_space<vmem>>, %arg2: memref<8x16xbf16, #tpu.memory_space<vmem>>, %arg3: memref<32x64xbf16, #tpu.memory_space<vmem>>, %arg4: memref<16x64xbf16, #tpu.memory_space<vmem>>, %arg5: memref<1x64xf32, #tpu.memory_space<vmem>>, %arg6: memref<64x32xbf16, #tpu.memory_space<vmem>>, %arg7: memref<1x32xf32, #tpu.memory_space<vmem>>, %arg8: memref<1x32xf32, #tpu.memory_space<vmem>>, %arg9: memref<1x32xf32, #tpu.memory_space<vmem>>, %arg10: memref<8x32xf32, #tpu.memory_space<vmem>>) attributes {dimension_semantics = [#tpu.dimension_semantics<parallel>], iteration_bounds = array<i64: 2>, scalar_prefetch = 0 : i64, scratch_operands = 0 : i64, tpu.core_type = #tpu.core_type<tc>, window_params = [{transform_indices = @transform_0, window_bounds = array<i64: 8, 32>}, {transform_indices = @transform_1, window_bounds = array<i64: 8, 16>}, {pipeline_mode = #tpu.pipeline_mode<synchronous>, transform_indices = @transform_2, window_bounds = array<i64: 32, 64>}, {pipeline_mode = #tpu.pipeline_mode<synchronous>, transform_indices = @transform_3, window_bounds = array<i64: 16, 64>}, {pipeline_mode = #tpu.pipeline_mode<synchronous>, transform_indices = @transform_4, window_bounds = array<i64: 1, 64>}, {pipeline_mode = #tpu.pipeline_mode<synchronous>, transform_indices = @transform_5, window_bounds = array<i64: 64, 32>}, {pipeline_mode = #tpu.pipeline_mode<synchronous>, transform_indices = @transform_6, window_bounds = array<i64: 1, 32>}, {pipeline_mode = #tpu.pipeline_mode<synchronous>, transform_indices = @transform_7, window_bounds = array<i64: 1, 32>}, {pipeline_mode = #tpu.pipeline_mode<synchronous>, transform_indices = @transform_8, window_bounds = array<i64: 1, 32>}, {transform_indices = @transform_9, window_bounds = array<i64: 8, 32>}]} {
    %c0 = arith.constant 0 : index
    %c0_0 = arith.constant 0 : index
    %0 = vector.load %arg1[%c0, %c0_0] : memref<8x32xbf16, #tpu.memory_space<vmem>>, vector<8x32xbf16>
    %c0_1 = arith.constant 0 : index
    %c0_2 = arith.constant 0 : index
    %1 = vector.load %arg2[%c0_1, %c0_2] : memref<8x16xbf16, #tpu.memory_space<vmem>>, vector<8x16xbf16>
    %c0_3 = arith.constant 0 : index
    %c0_4 = arith.constant 0 : index
    %2 = vector.load %arg3[%c0_3, %c0_4] : memref<32x64xbf16, #tpu.memory_space<vmem>>, vector<32x64xbf16>
    %cst = arith.constant dense<0.000000e+00> : vector<8x64xf32>
    %3 = tpu.matmul %0, %2, %cst {dimension_numbers = #tpu.dot_dimension_numbers<[1], [0], [0], [1], [0, 0, 1, 1], [], []>} : vector<8x32xbf16>, vector<32x64xbf16>, vector<8x64xf32> -> vector<8x64xf32>
    %c0_5 = arith.constant 0 : index
    %c0_6 = arith.constant 0 : index
    %4 = vector.load %arg4[%c0_5, %c0_6] : memref<16x64xbf16, #tpu.memory_space<vmem>>, vector<16x64xbf16>
    %cst_7 = arith.constant dense<0.000000e+00> : vector<8x64xf32>
    %5 = tpu.matmul %1, %4, %cst_7 {dimension_numbers = #tpu.dot_dimension_numbers<[1], [0], [0], [1], [0, 0, 1, 1], [], []>} : vector<8x16xbf16>, vector<16x64xbf16>, vector<8x64xf32> -> vector<8x64xf32>
    %6 = arith.addf %3, %5 : vector<8x64xf32>
    %c0_8 = arith.constant 0 : index
    %c0_9 = arith.constant 0 : index
    %7 = vector.load %arg5[%c0_8, %c0_9] : memref<1x64xf32, #tpu.memory_space<vmem>>, vector<1x64xf32>
    %8 = vector.broadcast %7 : vector<1x64xf32> to vector<8x64xf32>
    %9 = arith.addf %6, %8 : vector<8x64xf32>
    %cst_10 = arith.constant 0.000000e+00 : f32
    %10 = vector.broadcast %cst_10 : f32 to vector<8x64xf32>
    %11 = arith.cmpf ogt, %9, %10 : vector<8x64xf32>
    %cst_11 = arith.constant 0.000000e+00 : f32
    %12 = vector.broadcast %cst_11 : f32 to vector<8x64xf32>
    %13 = arith.minimumf %9, %12 : vector<8x64xf32>
    %14 = math.exp %13 : vector<8x64xf32>
    %cst_12 = arith.constant 1.000000e+00 : f32
    %15 = vector.broadcast %cst_12 : f32 to vector<8x64xf32>
    %16 = arith.subf %14, %15 : vector<8x64xf32>
    %17 = arith.select %11, %9, %16 : vector<8x64xi1>, vector<8x64xf32>
    %18 = arith.truncf %17 : vector<8x64xf32> to vector<8x64xbf16>
    %c0_13 = arith.constant 0 : index
    %c0_14 = arith.constant 0 : index
    %19 = vector.load %arg6[%c0_13, %c0_14] : memref<64x32xbf16, #tpu.memory_space<vmem>>, vector<64x32xbf16>
    %cst_15 = arith.constant dense<0.000000e+00> : vector<8x32xf32>
    %20 = tpu.matmul %18, %19, %cst_15 {dimension_numbers = #tpu.dot_dimension_numbers<[1], [0], [0], [1], [0, 0, 1, 1], [], []>} : vector<8x64xbf16>, vector<64x32xbf16>, vector<8x32xf32> -> vector<8x32xf32>
    %c0_16 = arith.constant 0 : index
    %c0_17 = arith.constant 0 : index
    %21 = vector.load %arg7[%c0_16, %c0_17] : memref<1x32xf32, #tpu.memory_space<vmem>>, vector<1x32xf32>
    %22 = vector.broadcast %21 : vector<1x32xf32> to vector<8x32xf32>
    %23 = arith.addf %20, %22 : vector<8x32xf32>
    %24 = arith.mulf %23, %23 : vector<8x32xf32>
    %25 = arith.extf %0 : vector<8x32xbf16> to vector<8x32xf32>
    %26 = arith.addf %24, %25 : vector<8x32xf32>
    %cst_18 = arith.constant dense<0.000000e+00> : vector<8xf32>
    %27 = vector.multi_reduction <add>, %26, %cst_18 [1] : vector<8x32xf32> to vector<8xf32>
    %28 = vector.shape_cast %27 : vector<8xf32> to vector<8x1xf32>
    %29 = arith.mulf %26, %26 : vector<8x32xf32>
    %cst_19 = arith.constant dense<0.000000e+00> : vector<8xf32>
    %30 = vector.multi_reduction <add>, %29, %cst_19 [1] : vector<8x32xf32> to vector<8xf32>
    %31 = vector.shape_cast %30 : vector<8xf32> to vector<8x1xf32>
    %cst_20 = arith.constant 3.125000e-02 : f32
    %32 = vector.broadcast %cst_20 : f32 to vector<8x1xf32>
    %33 = arith.mulf %28, %32 : vector<8x1xf32>
    %cst_21 = arith.constant 3.125000e-02 : f32
    %34 = vector.broadcast %cst_21 : f32 to vector<8x1xf32>
    %35 = arith.mulf %31, %34 : vector<8x1xf32>
    %36 = arith.mulf %33, %33 : vector<8x1xf32>
    %37 = arith.subf %35, %36 : vector<8x1xf32>
    %38 = vector.broadcast %33 : vector<8x1xf32> to vector<8x32xf32>
    %39 = arith.subf %26, %38 : vector<8x32xf32>
    %cst_22 = arith.constant 9.99999974E-6 : f32
    %40 = vector.broadcast %cst_22 : f32 to vector<8x1xf32>
    %41 = arith.addf %37, %40 : vector<8x1xf32>
    %42 = math.rsqrt %41 : vector<8x1xf32>
    %43 = vector.broadcast %42 : vector<8x1xf32> to vector<8x32xf32>
    %44 = arith.mulf %39, %43 : vector<8x32xf32>
    %c0_23 = arith.constant 0 : index
    %c0_24 = arith.constant 0 : index
    %45 = vector.load %arg8[%c0_23, %c0_24] : memref<1x32xf32, #tpu.memory_space<vmem>>, vector<1x32xf32>
    %46 = vector.broadcast %45 : vector<1x32xf32> to vector<8x32xf32>
    %47 = arith.mulf %44, %46 : vector<8x32xf32>
    %c0_25 = arith.constant 0 : index
    %c0_26 = arith.constant 0 : index
    %48 = vector.load %arg9[%c0_25, %c0_26] : memref<1x32xf32, #tpu.memory_space<vmem>>, vector<1x32xf32>
    %49 = vector.broadcast %48 : vector<1x32xf32> to vector<8x32xf32>
    %50 = arith.addf %47, %49 : vector<8x32xf32>
    %c0_27 = arith.constant 0 : index
    %c0_28 = arith.constant 0 : index
    %51 = vector.load %arg10[%c0_27, %c0_28] : memref<8x32xf32, #tpu.memory_space<vmem>>, vector<8x32xf32>
    tpu.vector_store %arg10[%c0_27, %c0_28], %50 {strides = array<i32>} : memref<8x32xf32, #tpu.memory_space<vmem>>, vector<8x32xf32>,
    return
  }
  func.func @transform_0(%arg0: i32) -> (i32, i32) {
    %c0_i32 = arith.constant 0 : i32
    %c0_i32_0 = arith.constant 0 : i32
    return %arg0, %c0_i32 : i32, i32
  }
  func.func @transform_1(%arg0: i32) -> (i32, i32) {
    %c0_i32 = arith.constant 0 : i32
    %c0_i32_0 = arith.constant 0 : i32
    return %arg0, %c0_i32 : i32, i32
  }
  func.func @transform_2(%arg0: i32) -> (i32, i32) {
    %c0_i32 = arith.constant 0 : i32
    %c0_i32_0 = arith.constant 0 : i32
    %c0_i32_1 = arith.constant 0 : i32
    return %c0_i32, %c0_i32_0 : i32, i32
  }
  func.func @transform_3(%arg0: i32) -> (i32, i32) {
    %c0_i32 = arith.constant 0 : i32
    %c0_i32_0 = arith.constant 0 : i32
    %c0_i32_1 = arith.constant 0 : i32
    return %c0_i32, %c0_i32_0 : i32, i32
  }
  func.func @transform_4(%arg0: i32) -> (i32, i32) {
    %c0_i32 = arith.constant 0 : i32
    %c0_i32_0 = arith.constant 0 : i32
    %c0_i32_1 = arith.constant 0 : i32
    return %c0_i32, %c0_i32_0 : i32, i32
  }
  func.func @transform_5(%arg0: i32) -> (i32, i32) {
    %c0_i32 = arith.constant 0 : i32
    %c0_i32_0 = arith.constant 0 : i32
    %c0_i32_1 = arith.constant 0 : i32
    return %c0_i32, %c0_i32_0 : i32, i32
  }
  func.func @transform_6(%arg0: i32) -> (i32, i32) {
    %c0_i32 = arith.constant 0 : i32
    %c0_i32_0 = arith.constant 0 : i32
    %c0_i32_1 = arith.constant 0 : i32
    return %c0_i32, %c0_i32_0 : i32, i32
  }
  func.func @transform_7(%arg0: i32) -> (i32, i32) {
    %c0_i32 = arith.constant 0 : i32
    %c0_i32_0 = arith.constant 0 : i32
    %c0_i32_1 = arith.constant 0 : i32
    return %c0_i32, %c0_i32_0 : i32, i32
  }
  func.func @transform_8(%arg0: i32) -> (i32, i32) {
    %c0_i32 = arith.constant 0 : i32
    %c0_i32_0 = arith.constant 0 : i32
    %c0_i32_1 = arith.constant 0 : i32
    return %c0_i32, %c0_i32_0 : i32, i32
  }
  func.func @transform_9(%arg0: i32) -> (i32, i32) {
    %c0_i32 = arith.constant 0 : i32
    %c0_i32_0 = arith.constant 0 : i32
    return %arg0, %c0_i32 : i32, i32
  }
}

</mosaic_0001>

<bundles_post_ra>
// kernel: tpu_custom_call.1
= control target key start
LH: loop header
LB: loop body
LE: loop exit
PB: predicated region body
PF: predicated region fallthrough
CT: control target
= control target key end

     0   :  { %14 = vsyncpa [#allocation3], 0  ;;  %s932_s0 = inlined_call_operand.vmem [shape: bf16[16,32], index: 0, kind: input, shape index: {}]   ;;  %s933_s1 = inlined_call_operand.vmem [shape: bf16[16,16], index: 1, kind: input, shape index: {}]   ;;  %s934_s2 = inlined_call_operand.vmem [shape: bf16[32,64], index: 2, kind: input, shape index: {}]   ;;  %s935_s3 = inlined_call_operand.vmem [shape: bf16[16,64], index: 3, kind: input, shape index: {}]   ;;  %s936_s4 = inlined_call_operand.vmem [shape: f32[1,64], index: 4, kind: input, shape index: {}]   ;;  %s937_s5 = inlined_call_operand.vmem [shape: bf16[64,32], index: 5, kind: input, shape index: {}]   ;;  %s938_s6 = inlined_call_operand.vmem [shape: f32[1,32], index: 6, kind: input, shape index: {}]   ;;  %s939_s7 = inlined_call_operand.vmem [shape: f32[1,32], index: 7, kind: input, shape index: {}]   ;;  %s940_s8 = inlined_call_operand.vmem [shape: f32[1,32], index: 8, kind: input, shape index: {}]   ;;  %s941_s9 = inlined_call_operand.hbm [shape: f32[16,32], index: 9, kind: output, shape index: {}]  }
   0x1   :  { %16 = vsyncpa [#allocation3 + $0x1], 0  ;;  %s807_s30 = smov 0   ;;  %s809_s10 = smov 0  }
   0x2   :  { %s811_s11 = smov 0   ;;  %s813_s12 = smov 0  }
   0x3 LB: > { %s828_s13 = sadd.s32 4294967295, %s755_s12   ;;  %s596_s14 = sadd.s32 4294967294, %s755_s12   ;;  %s755_s12 = sphi %s813_s12, %s947_s12   ;;  %s751_s11 = sphi %s811_s11, %s946_s11   ;;  %s747_s10 = sphi %s809_s10, %s945_s10   ;;  %s743_s30 = sphi %s807_s30, %s944_s30  }
   0x4   : > { %s832_s15 = sadd.s32 1, %s755_s12   ;;  %s228_s16 = sadd.s32 1, %s751_s11 }
   0x5   : > { %s225_s17 = ssub.s32 %s755_s12, %s832_s15  ;;  %p238_p0 = scmp.ne.s32.totalorder %s751_s11, %s747_s10 }
   0x6   : > { %p226_p1 = scmp.eq.s32.totalorder %s225_s17, 0  ;;  %p239_p2 = scmp.eq.s32.totalorder %s828_s13, 1 }
   0x7   : > { %p244_p3 = scmp.ne.s32.totalorder %s747_s10, %s743_s30  ;;  %p245_p4 = scmp.eq.s32.totalorder %s596_s14, 1 }
   0x8   : > { %s843_s18 = scalar_select %p226_p1, %s751_s11, %s228_s16  }
   0x9   : > { %p845_p5 = por %p239_p2, %p238_p0  ;;  %p849_p6 = por %p245_p4, %p244_p3 }
   0xa   : > { %p599_p7 = scmp.ge.s32.totalorder %s755_s12, 1  ;;  %p298_p8 = scmp.lt.s32.totalorder %s755_s12, 3 }
   0xc   : > { %p299_p9 = pnand %p599_p7, %p298_p8 }
   0xd   : > { %p337_p10 = scmp.lt.s32.totalorder (!%p299_p9), %s828_s13, 1  ;;  %s334_s23 = sand.u32 (!%p299_p9), 1, %s747_s10  }
   0xe   : > { %302 = sbr.rel (%p299_p9) target bundleno = 469 (0x1d5), region = 56  ;;  %s600_s24 = sshll.u32 (!%p299_p9), %s334_s23, 3 }
   0xf   : > { %s510_s26 = scalar_lea.sflag (!%p299_p9), [#allocation3], %s334_s23 }
  0x13   : > { %v640_v0 = vld [vmem:[%s934_s2 + $0x8] sm:$0xff]  ;;  %v641_v1 = vld [vmem:[%s935_s3] sm:$0xff]  ;;  %s338_s25 = scalar_select %p337_p10, %s828_s13, 1  ;;  %vm360_vm0 = vcmask 130048   ;;  %vm389_vm1 = vcmask 261120   ;;  %v645_v5 = vld [vmem:[%s937_s5 + $0x18] sm:$0xff] }
  0x14   : > { %399 = vmatpush.bf16.msra.mxu1 %v640_v0  ;;  %371 = vmatpush.bf16.msra.mxu0 %v641_v1  ;;  %v639_v2 = vld [vmem:[%s934_s2] sm:$0xff]  ;;  %v644_v6 = vld [vmem:[%s937_s5 + $0x10] sm:$0xff]  ;;  %v643_v7 = vld [vmem:[%s937_s5 + $0x8] sm:$0xff]  ;;  %vm454_vm3 = vcmask 523264  }
  0x15   : > { %s601_s28 = sshll.u32 %s338_s25, 2  ;;  %462 = vmatpush.bf16.msra.mxu2 %v645_v5  ;;  %v642_v8 = vld [vmem:[%s937_s5] sm:$0xff]  ;;  %s636_s25 = sshll.u32 %s828_s13, 3 }
  0x16   : > { %s344_s16 = scalar_lea.vmem %s933_s1, %s601_s28  ;;  %s340_s22 = scalar_lea.vmem %s932_s0, %s601_s28  ;;  %v685_v10 = vld [vmem:[%s936_s4] ss:$0 sm:$0xff] }
  0x17   : > { %v347_v3 = vld [vmem:[%s344_s16] sm:$0xf]  ;;  %s520_s14 = scalar_lea.hbm %s941_s9, %s636_s25  ;;  %s336_s13 = scalar_lea.vmem [#allocation2], %s600_s24 }
  0x18   : > { %400 = vmatpush.bf16.msra.mxu1 %v639_v2  ;;  %v346_v4 = vld [vmem:[%s340_s22] sm:$0xf]  ;;  %607 = vmatmul.msk.bf16.vlgmr.msra.gmra.mxu0 %vm360_vm0, %v347_v3  ;;  %s522_s21 = sshll.u32 %s336_s13, 4  ;;  %s524_s22 = sshll.u32 %s520_s14, 4  ;;  %s523_s21 = int_to_ptr.vmem [resolvable:$true] %s522_s21  ;;  %s525_s22 = int_to_ptr.hbm [resolvable:$true] %s524_s22 }
  0x19   : > { %463 = vmatpush.bf16.msra.mxu2 %v644_v6  ;;  %v686_v22 = vld [vmem:[%s938_s6] ss:$0 sm:$0xff]  ;;  %v472_v24 = vunpack.c.l.bf16 %v346_v4  ;;  %s707_s27 = sshra.s32 %s525_s22, 4  ;;  %s713_s24 = scalar_lea.hbm %s941_s9, 16  ;;  %s708_s27 = int_to_ptr.hbm [resolvable:$true] %s707_s27 }
  0x1a   : > { %v687_v46 = vld [vmem:[%s939_s7] ss:$0 sm:$0xff]  ;;  %s709_s25 = scalar_lea.hbm %s708_s27, 8  ;;  %p714_p0 = scmp.lt.s32.totalorder %s708_s27, %s941_s9 }
  0x1b   : > { %616 = vmatmul.msk.bf16.vlgmr.msra.gmra.mxu1 %vm389_vm1, %v346_v4  ;;  %v688_v49 = vld [vmem:[%s940_s8] ss:$0 sm:$0xff]  ;;  %p710_p11 = scmp.ne.s32.totalorder %s708_s27, %s709_s25  ;;  %p715_p1 = scmp.lt.s32.totalorder %s713_s24, %s709_s25 }
  0x1d   : > { %464 = vmatpush.bf16.msra.mxu2 %v643_v7  ;;  %p711_p12 = pnand %p710_p11, %p845_p5  ;;  %p716_p2 = por %p715_p1, %p714_p0 }
  0x1f   : > { %p712_p13 = pneg %p711_p12 }
  0x21   : > { %465 = vmatpush.bf16.msra.mxu2 %v642_v8  ;;  %p717_p3 = pnand %p716_p2, %p712_p13 }
  0x95   : > { %v373_v9 = vpop.f32.mrf.mxu0 }
  0x98   : > { %v402_v11 = vpop.f32.mrf.mxu1 }
  0x99   : > { %v403_v12 = vadd.f32 %v402_v11, %v373_v9 }
  0x9b   : > { %v410_v13 = vadd.f32 %v685_v10, %v403_v12 }
  0x9d   : > { %v412_v14 = vmin.f32 %v410_v13, 0.0  ;;  %v375_v15 = vpop.f32.mrf.mxu0  ;;  %vm411_vm2 = vcmp.gt.f32.partialorder %v410_v13, 0.0 }
  0x9f   : > { %v413_v16 = vmul.f32 1.442695, %v412_v14 }
  0xa0   : > { %v404_v17 = vpop.f32.mrf.mxu1 }
  0xa1   : > { %689 = vpow2.f32 %v413_v16 }
  0xa7   : > { %v690_v18 = vpop.eup %689 }
  0xa8   : > { %v617_v19 = vadd.f32 -1.0, %v690_v18 }
  0xaa   : > { %v416_v20 = vsel %vm411_vm2, %v410_v13, %v617_v19 }
  0xab   : > { %v417_v21 = vpack.c.bf16 %v416_v20, %v416_v20 }
  0xad   : > { %634 = vmatmul.msk.bf16.vlgmr.msra.gmra.mxu2 %vm454_vm3, %v417_v21 }
 0x130   : > { %v467_v23 = vpop.f32.mrf.mxu2 }
 0x131   : > { %v468_v25 = vadd.f32 %v686_v22, %v467_v23 }
 0x133   : > { %v471_v26 = vmul.f32 %v468_v25, %v468_v25 }
 0x135   : > { %v473_v27 = vadd.f32 %v472_v24, %v471_v26 }
 0x137   : > { %v474_v28 = vsel %vm389_vm1, %v473_v27, 0.0  ;;  %v477_v30 = vmul.f32 %v473_v27, %v473_v27 }
 0x138   : > { %v469_v29 = vpop.f32.mrf.mxu2  ;;  %475 = vadd.xlane.f32.xlu0 %v474_v28 }
 0x139   : > { %v478_v31 = vsel %vm389_vm1, %v477_v30, 0.0 }
 0x140   : > { %479 = vadd.xlane.f32.xlu0 %v478_v31 }
 0x1ab   : > { %v476_v32 = vpop.xlane.xlu0 %475 }
 0x1ac   : > { %v481_v33 = vmul.f32 0.03125, %v476_v32 }
 0x1ae   : > { %v483_v35 = vmul.f32 %v481_v33, %v481_v33  ;;  %v485_v45 = vsub.f32 %v473_v27, %v481_v33 }
 0x1b3   : > { %v480_v34 = vpop.xlane.xlu0 %479 }
 0x1b4   : > { %v482_v36 = vmul.f32 0.03125, %v480_v34 }
 0x1b6   : > { %v484_v37 = vsub.f32 %v482_v36, %v483_v35 }
 0x1b8   : > { %v486_v38 = vadd.f32 1e-05, %v484_v37 }
 0x1ba   : > { %691 = vrsqrt.f32 %v486_v38  ;;  %vm493_vm5 = vweird.f32 %v486_v38 }
 0x1c0   : > { %v692_v39 = vpop.eup %691 }
 0x1c1   : > { %v488_v40 = vmul.f32 %v692_v39, %v486_v38  ;;  %vm494_vm4 = vweird.f32 %v692_v39 }
 0x1c2   : > { %vm495_vm6 = vmor %vm493_vm5, %vm494_vm4 }
 0x1c3   : > { %v489_v41 = vmul.f32 %v692_v39, %v488_v40 }
 0x1c5   : > { %v490_v42 = vmul.f32 0.5, %v489_v41 }
 0x1c7   : > { %v491_v43 = vsub.f32 1.5, %v490_v42 }
 0x1c9   : > { %v492_v44 = vmul.f32 %v692_v39, %v491_v43 }
 0x1cb   : > { %v496_v47 = vsel %vm495_vm6, %v692_v39, %v492_v44 }
 0x1cc   : > { %v497_v48 = vmul.f32 %v496_v47, %v485_v45 }
 0x1ce   : > { %v502_v50 = vmul.f32 %v687_v46, %v497_v48 }
 0x1d0   : > { %v507_v51 = vadd.f32 %v688_v49, %v502_v50 }
 0x1d2   : > { %508 = vst.msk [vmem:[%s336_s13] sm:$0xff] %vm389_vm1, %v507_v51 }
 0x1d3   : > { %720 = shalt.err (!%p717_p3)
}
 0x1d4   : > { %646 = dma.vmem_to_hbm [thread:$0]  (%p845_p5), %s523_s21, 128, %s525_s22, %s510_s26  }
 0x1d5 PF: > { %p652_p4 = scmp.ge.s32.totalorder %s755_s12, 2  ;;  %s536_s23 = sand.u32 1, %s743_s30  }
 0x1d6   : > { %s537_s17 = scalar_lea.sflag [#allocation3], %s536_s23 }
 0x1d7   : > { %p649_p7 = pnand %p652_p4, %p849_p6 }
 0x1d9   : > { %p650_p8 = pneg %p649_p7 }
 0x1db   : > { %738 = dma.done.wait (%p650_p8), %s537_s17, 128  }
 0x1dc   : > { %740 = vsyncadd (%p650_p8), %s537_s17, 4294967168  ;;  %p19_p9 = scmp.ge.s32.totalorder %s832_s15, 4   ;;  %s944_s30 = smov %s747_s10 }
 0x1dd   : > { %s945_s10 = smov %s751_s11  ;;  %s946_s11 = smov %s843_s18 }
 0x1de   : > { %s947_s12 = smov %s832_s15  ;;  %21 = sbr.rel (!%p19_p9) target bundleno = 3 (0x3), region = 94 }
 0x1e3   :  { %543 = vsyncpa [#allocation3], 1 }
 0x1e4   :  { %545 = vsyncpa [#allocation3 + $0x1], 1 }

</bundles_post_ra>
